<compile_context>
chip_gen: v7x
topology: tpu7x:2x2x1
jax: 0.10.0
libtpu: 0.0.40
codegen_flags: <defaults>
</compile_context>

<pallas_src>
from functools import partial

import jax
import jax.numpy as jnp
from jax.experimental import pallas as pl
from jax.experimental.pallas import tpu as pltpu

_LANE = 128
_SUBTILE = _LANE * 16  # 2048-element batch granule: legal sublane tiling for f32 & bf16


def _mlp_kernel(p_ref, x_ref, o_ref, *, din, hidden, dout):
    """Fused MLP on a sublane+lane dense batch tile.

    p_ref : SMEM f32 vector [w1(din*hidden) | b1(hidden) | w2(hidden*dout) | b2(dout)],
            w1 stored [in, out], w2 stored [hidden, out] (row-major).
    x_ref : VMEM (din,  TB//128, 128)  (f32 or bf16)
    o_ref : VMEM (dout, TB//128, 128)  f32
    """
    w1_off = 0
    b1_off = din * hidden
    w2_off = b1_off + hidden
    b2_off = w2_off + hidden * dout

    # Hoist all 13 scalar parameter reads out of the unrolled loops.
    w1 = [[p_ref[w1_off + i * hidden + j] for j in range(hidden)] for i in range(din)]
    b1 = [p_ref[b1_off + j] for j in range(hidden)]
    w2 = [[p_ref[w2_off + j * dout + o] for o in range(dout)] for j in range(hidden)]
    b2 = [p_ref[b2_off + o] for o in range(dout)]

    # One (TB//128, 128) dense tile per input feature; upcast (handles bf16 inputs).
    xs = [x_ref[i].astype(jnp.float32) for i in range(din)]

    # Fused hidden + output: compute each hidden unit, immediately fold it into the
    # output accumulators (no hs[] list of full-tile temporaries).
    ys = [None] * dout
    for j in range(hidden):
        h = xs[0] * w1[0][j]
        for i in range(1, din):
            h = h + xs[i] * w1[i][j]
        h = jnp.maximum(h + b1[j], 0.0)
        for o in range(dout):
            t = h * w2[j][o]
            ys[o] = t if ys[o] is None else ys[o] + t

    for o in range(dout):
        o_ref[o] = (ys[o] + b2[o]).astype(o_ref.dtype)


def pm_model_single_feature_major(x_t, w1, b1, w2, b2, *, tile_b=262144):
    """Feature-major forward: x_t is (din, B); returns (dout, B) float32.

    Use this entry point directly when the surrounding graph already holds
    feature-major activations — it avoids the transpose plumbing entirely.
    """
    din, B = x_t.shape
    hidden = w1.shape[1]
    dout = w2.shape[1]

    # Pack all parameters into one small f32 vector -> scalar-prefetched into SMEM.
    params = jnp.concatenate(
        [w1.reshape(-1), b1.reshape(-1), w2.reshape(-1), b2.reshape(-1)]
    ).astype(jnp.float32)

    # Keep bf16 activations in bf16 through HBM (kernel upcasts); everything else f32.
    if x_t.dtype == jnp.bfloat16 or x_t.dtype == jnp.float32:
        x_dt = x_t.dtype
    else:
        x_dt = jnp.float32
        x_t = x_t.astype(jnp.float32)

    # Choose the batch tile:
    #  - small batches: a single full-extent block (any lane-aligned size is legal);
    #  - large batches: tiles that are multiples of _SUBTILE (legal f32/bf16 tiling),
    #    sized so there are always >= 2 grid steps (shards across both v7x TCs) and
    #    capped at tile_b (~2 MiB input tile) so per-step DMA dwarfs step overhead.
    b_lanes = pl.cdiv(max(B, 1), _LANE) * _LANE
    if b_lanes <= 2 * _SUBTILE:
        tb = b_lanes
        b_pad = b_lanes
    else:
        tb = min(max(tile_b, _SUBTILE), pl.cdiv(b_lanes, 2 * _SUBTILE) * _SUBTILE)
        b_pad = pl.cdiv(b_lanes, tb) * tb

    if b_pad != B:
        x_t = jnp.pad(x_t, ((0, 0), (0, b_pad - B)))

    # Sublane+lane dense layout: (din, b_pad//128, 128). Minor-dim split -> free reshape.
    x_3d = x_t.reshape(din, b_pad // _LANE, _LANE)

    tsub = tb // _LANE
    grid = (b_pad // tb,)
    kernel = partial(_mlp_kernel, din=din, hidden=hidden, dout=dout)

    out_3d = pl.pallas_call(
        kernel,
        out_shape=jax.ShapeDtypeStruct((dout, b_pad // _LANE, _LANE), jnp.float32),
        grid_spec=pltpu.PrefetchScalarGridSpec(
            num_scalar_prefetch=1,  # params -> SMEM
            grid=grid,
            in_specs=[pl.BlockSpec((din, tsub, _LANE), lambda i, p: (0, i, 0))],
            out_specs=pl.BlockSpec((dout, tsub, _LANE), lambda i, p: (0, i, 0)),
        ),
        compiler_params=pltpu.CompilerParams(
            dimension_semantics=("parallel",),  # shard batch tiles across TCs (v7x)
        ),
    )(params, x_3d)

    # Padded batch lanes hold relu(b1)@w2 + b2 garbage; drop them here.
    return out_3d.reshape(dout, b_pad)[:, :B]


def pm_model_single(x3, w1, b1, w2, b2, *, tile_b=262144):
    """Forward pass of PMModelSingle: x3 is (B, din); returns float32 (B, dout).

    Weights are stored [in, out] (transpose of torch's [out, in]) so the math is
    y = relu(x @ w1 + b1) @ w2 + b2, identical to the PyTorch module.
    NOTE: the two transposes here are pure layout plumbing to match the torch API;
    prefer pm_model_single_feature_major when the caller can provide (din, B) data.
    """
    out_t = pm_model_single_feature_major(x3.T, w1, b1, w2, b2, tile_b=tile_b)
    return out_t.T


def init_params(key, tabular_input_count=2, hidden=3, tabular_features=1):
    """Deterministic synthetic init (uniform, like torch's default range)."""
    k1, k2, k3, k4 = jax.random.split(key, 4)
    lim1 = 1.0 / jnp.sqrt(tabular_input_count)
    lim2 = 1.0 / jnp.sqrt(hidden)
    # Stored as [in, out] (transpose of torch's [out, in]) so the kernel does x @ W.
    w1 = jax.random.uniform(k1, (tabular_input_count, hidden), jnp.float32, -lim1, lim1)
    b1 = jax.random.uniform(k2, (hidden,), jnp.float32, -lim1, lim1)
    w2 = jax.random.uniform(k3, (hidden, tabular_features), jnp.float32, -lim2, lim2)
    b2 = jax.random.uniform(k4, (tabular_features,), jnp.float32, -lim2, lim2)
    return w1, b1, w2, b2


if __name__ == "__main__":
    key = jax.random.PRNGKey(0)
    k_x, k_p = jax.random.split(key)

    tabular_input_count = 2
    tabular_features = 1
    w1, b1, w2, b2 = init_params(k_p, tabular_input_count, 3, tabular_features)

    # Small shapes (non-128-multiple batches exercise padding) plus one batch large
    # enough to take the multi-step tiled path.
    for batch in (8, 200, 256, 5000):
        kx = jax.random.fold_in(k_x, batch)
        x3 = jax.random.normal(kx, (batch, tabular_input_count), dtype=jnp.float32)

        out = pm_model_single(x3, w1, b1, w2, b2)
        jax.block_until_ready(out)

        ref = jnp.maximum(x3 @ w1 + b1, 0.0) @ w2 + b2
        assert out.shape == (batch, tabular_features)
        assert out.dtype == jnp.float32
        assert jnp.allclose(out, ref, atol=1e-5, rtol=1e-5)

    # bf16 activation path: bf16 stays bf16 through HBM, kernel upcasts to f32.
    x3_bf = jax.random.normal(jax.random.fold_in(k_x, 999), (300, tabular_input_count))
    x3_bf = x3_bf.astype(jnp.bfloat16)
    out_bf = pm_model_single(x3_bf, w1, b1, w2, b2)
    jax.block_until_ready(out_bf)
    ref_bf = jnp.maximum(x3_bf.astype(jnp.float32) @ w1 + b1, 0.0) @ w2 + b2
    assert out_bf.dtype == jnp.float32
    assert jnp.allclose(out_bf, ref_bf, atol=1e-5, rtol=1e-5)

    print("KERNEL_OK")
</pallas_src>

<mosaic_0001>
module attributes {stable_mosaic.version = 11 : i64} {
  func.func @_mlp_kernel(%arg0: i32, %arg1: memref<13xf32, #tpu.memory_space<smem>>, %arg2: memref<2x1x128xf32, #tpu.memory_space<vmem>>, %arg3: memref<1x1x128xf32, #tpu.memory_space<vmem>>) attributes {dimension_semantics = [#tpu.dimension_semantics<parallel>], iteration_bounds = array<i64: 1>, scalar_prefetch = 1 : i64, scratch_operands = 0 : i64, tpu.core_type = #tpu.core_type<tc>, window_params = [{transform_indices = @transform_0, window_bounds = array<i64: 2, 1, 128>}, {transform_indices = @transform_1, window_bounds = array<i64: 1, 1, 128>}]} {
    %c0 = arith.constant 0 : index
    %0 = memref.load %arg1[%c0] : memref<13xf32, #tpu.memory_space<smem>>
    %c1 = arith.constant 1 : index
    %1 = memref.load %arg1[%c1] : memref<13xf32, #tpu.memory_space<smem>>
    %c2 = arith.constant 2 : index
    %2 = memref.load %arg1[%c2] : memref<13xf32, #tpu.memory_space<smem>>
    %c3 = arith.constant 3 : index
    %3 = memref.load %arg1[%c3] : memref<13xf32, #tpu.memory_space<smem>>
    %c4 = arith.constant 4 : index
    %4 = memref.load %arg1[%c4] : memref<13xf32, #tpu.memory_space<smem>>
    %c5 = arith.constant 5 : index
    %5 = memref.load %arg1[%c5] : memref<13xf32, #tpu.memory_space<smem>>
    %c6 = arith.constant 6 : index
    %6 = memref.load %arg1[%c6] : memref<13xf32, #tpu.memory_space<smem>>
    %c7 = arith.constant 7 : index
    %7 = memref.load %arg1[%c7] : memref<13xf32, #tpu.memory_space<smem>>
    %c8 = arith.constant 8 : index
    %8 = memref.load %arg1[%c8] : memref<13xf32, #tpu.memory_space<smem>>
    %c9 = arith.constant 9 : index
    %9 = memref.load %arg1[%c9] : memref<13xf32, #tpu.memory_space<smem>>
    %c10 = arith.constant 10 : index
    %10 = memref.load %arg1[%c10] : memref<13xf32, #tpu.memory_space<smem>>
    %c11 = arith.constant 11 : index
    %11 = memref.load %arg1[%c11] : memref<13xf32, #tpu.memory_space<smem>>
    %c12 = arith.constant 12 : index
    %12 = memref.load %arg1[%c12] : memref<13xf32, #tpu.memory_space<smem>>
    %c0_0 = arith.constant 0 : index
    %c0_1 = arith.constant 0 : index
    %c0_2 = arith.constant 0 : index
    %13 = vector.load %arg2[%c0_0, %c0_1, %c0_2] : memref<2x1x128xf32, #tpu.memory_space<vmem>>, vector<1x1x128xf32>
    %14 = vector.shape_cast %13 : vector<1x1x128xf32> to vector<1x128xf32>
    %c1_3 = arith.constant 1 : index
    %c0_4 = arith.constant 0 : index
    %c0_5 = arith.constant 0 : index
    %15 = vector.load %arg2[%c1_3, %c0_4, %c0_5] : memref<2x1x128xf32, #tpu.memory_space<vmem>>, vector<1x1x128xf32>
    %16 = vector.shape_cast %15 : vector<1x1x128xf32> to vector<1x128xf32>
    %17 = vector.broadcast %0 : f32 to vector<1x128xf32>
    %18 = arith.mulf %14, %17 : vector<1x128xf32>
    %19 = vector.broadcast %3 : f32 to vector<1x128xf32>
    %20 = arith.mulf %16, %19 : vector<1x128xf32>
    %21 = arith.addf %18, %20 : vector<1x128xf32>
    %22 = vector.broadcast %6 : f32 to vector<1x128xf32>
    %23 = arith.addf %21, %22 : vector<1x128xf32>
    %cst = arith.constant 0.000000e+00 : f32
    %24 = vector.broadcast %cst : f32 to vector<1x128xf32>
    %25 = arith.maximumf %23, %24 : vector<1x128xf32>
    %26 = vector.broadcast %9 : f32 to vector<1x128xf32>
    %27 = arith.mulf %25, %26 : vector<1x128xf32>
    %28 = vector.broadcast %1 : f32 to vector<1x128xf32>
    %29 = arith.mulf %14, %28 : vector<1x128xf32>
    %30 = vector.broadcast %4 : f32 to vector<1x128xf32>
    %31 = arith.mulf %16, %30 : vector<1x128xf32>
    %32 = arith.addf %29, %31 : vector<1x128xf32>
    %33 = vector.broadcast %7 : f32 to vector<1x128xf32>
    %34 = arith.addf %32, %33 : vector<1x128xf32>
    %cst_6 = arith.constant 0.000000e+00 : f32
    %35 = vector.broadcast %cst_6 : f32 to vector<1x128xf32>
    %36 = arith.maximumf %34, %35 : vector<1x128xf32>
    %37 = vector.broadcast %10 : f32 to vector<1x128xf32>
    %38 = arith.mulf %36, %37 : vector<1x128xf32>
    %39 = arith.addf %27, %38 : vector<1x128xf32>
    %40 = vector.broadcast %2 : f32 to vector<1x128xf32>
    %41 = arith.mulf %14, %40 : vector<1x128xf32>
    %42 = vector.broadcast %5 : f32 to vector<1x128xf32>
    %43 = arith.mulf %16, %42 : vector<1x128xf32>
    %44 = arith.addf %41, %43 : vector<1x128xf32>
    %45 = vector.broadcast %8 : f32 to vector<1x128xf32>
    %46 = arith.addf %44, %45 : vector<1x128xf32>
    %cst_7 = arith.constant 0.000000e+00 : f32
    %47 = vector.broadcast %cst_7 : f32 to vector<1x128xf32>
    %48 = arith.maximumf %46, %47 : vector<1x128xf32>
    %49 = vector.broadcast %11 : f32 to vector<1x128xf32>
    %50 = arith.mulf %48, %49 : vector<1x128xf32>
    %51 = arith.addf %39, %50 : vector<1x128xf32>
    %52 = vector.broadcast %12 : f32 to vector<1x128xf32>
    %53 = arith.addf %51, %52 : vector<1x128xf32>
    %c0_8 = arith.constant 0 : index
    %c0_9 = arith.constant 0 : index
    %c0_10 = arith.constant 0 : index
    %54 = vector.load %arg3[%c0_8, %c0_9, %c0_10] : memref<1x1x128xf32, #tpu.memory_space<vmem>>, vector<1x1x128xf32>
    %55 = vector.shape_cast %54 : vector<1x1x128xf32> to vector<1x128xf32>
    %56 = vector.shape_cast %53 : vector<1x128xf32> to vector<1x1x128xf32>
    tpu.vector_store %arg3[%c0_8, %c0_9, %c0_10], %56 {strides = array<i32>} : memref<1x1x128xf32, #tpu.memory_space<vmem>>, vector<1x1x128xf32>,
    return
  }
  func.func @transform_0(%arg0: i32, %arg1: memref<13xf32, #tpu.memory_space<smem>>) -> (i32, i32, i32) {
    %c0_i32 = arith.constant 0 : i32
    %c0_i32_0 = arith.constant 0 : i32
    %c0_i32_1 = arith.constant 0 : i32
    return %c0_i32, %arg0, %c0_i32_0 : i32, i32, i32
  }
  func.func @transform_1(%arg0: i32, %arg1: memref<13xf32, #tpu.memory_space<smem>>) -> (i32, i32, i32) {
    %c0_i32 = arith.constant 0 : i32
    %c0_i32_0 = arith.constant 0 : i32
    %c0_i32_1 = arith.constant 0 : i32
    return %c0_i32, %arg0, %c0_i32_0 : i32, i32, i32
  }
}

</mosaic_0001>

<bundles_post_ra>
// kernel: tpu_custom_call.1
= control target key start
LH: loop header
LB: loop body
LE: loop exit
PB: predicated region body
PF: predicated region fallthrough
CT: control target
= control target key end

     0   :  { %s186_s0 = inlined_call_operand.hbm [shape: f32[13], index: 0, kind: input, shape index: {}]   ;;  %s187_s1 = inlined_call_operand.vmem [shape: f32[2,1,128], index: 1, kind: input, shape index: {}]   ;;  %s188_s2 = inlined_call_operand.hbm [shape: f32[1,1,128], index: 2, kind: output, shape index: {}]  }
   0x1   :  { %s94_s11 = scalar_lea.hbm %s186_s0, 16 }
   0x2   :  { %p95_p0 = scmp.ne.s32.totalorder %s186_s0, %s94_s11  ;;  %p98_p1 = scmp.lt.u32.totalorder %s94_s11, %s186_s0 }
   0x4   :  { %p100_p2 = pnand %p98_p1, %p95_p0 }
   0x6   :  { %103 = shalt.err (!%p100_p2)  }
   0x7   :  { %s130_s16 = smov [#allocation3]  }
   0x8   :  { %8 = dma.hbm_to_smem %s186_s0, 16, %s130_s16, [#allocation2] }
   0x9   :  { %126 = dma.done.wait [#allocation2], 16 }
   0xa   :  { %127 = vsyncadd [#allocation2], 4294967280 }
   0xb   :  { %10 = sfence }
   0xc   :  { %s14_s19 = sld [smem:[#allocation3]]  ;;  %s79_s20 = sld [smem:[#allocation3 + $0x1]] }
   0xd   :  { %s80_s21 = sld [smem:[#allocation3 + $0x2]]  ;;  %s81_s22 = sld [smem:[#allocation3 + $0x3]] }
   0xe   :  { %s82_s23 = sld [smem:[#allocation3 + $0x4]]  ;;  %s83_s24 = sld [smem:[#allocation3 + $0x5]] }
   0xf   :  { %11 = vsyncpa [#allocation5], 0  ;;  %s84_s25 = sld [smem:[#allocation3 + $0x6]]  ;;  %s85_s26 = sld [smem:[#allocation3 + $0x7]]  ;;  %v27_v0 = vld [vmem:[%s187_s1] sm:$0x1] }
  0x10   :  { %s86_s27 = sld [smem:[#allocation3 + $0x8]]  ;;  %s162_s30 = sld [smem:[#allocation3 + $0x9]]  ;;  %v91_v1 = vld [vmem:[%s187_s1 + $0x1] sm:$0x1] }
  0x11   :  { %s167_s4 = sld [smem:[#allocation3 + $0xa]]  ;;  %s169_s5 = sld [smem:[#allocation3 + $0xb]] }
  0x12   :  { %v30_v2 = vstv %s14_s19  ;;  %v40_v3 = vstv %s79_s20  ;;  %s90_s1 = sld [smem:[#allocation3 + $0xc]]  ;;  %s131_s6 = smov [#allocation4]  }
  0x13   :  { %v31_v4 = vmul.f32 %v30_v2, %v27_v0  ;;  %v32_v5 = vstv %s81_s22  ;;  %v41_v6 = vmul.f32 %v40_v3, %v27_v0  ;;  %v51_v7 = vstv %s80_s21  ;;  %s71_s7 = sshll.u32 %s131_s6, 4  ;;  %s72_s7 = int_to_ptr.vmem [resolvable:$true] %s71_s7 }
  0x14   :  { %v33_v8 = vmul.f32 %v91_v1, %v32_v5  ;;  %v42_v9 = vstv %s82_s23  ;;  %v52_v10 = vmul.f32 %v51_v7, %v27_v0  ;;  %v53_v11 = vstv %s83_s24  ;;  %s104_s8 = scalar_lea.vmem %s72_s7, 16  ;;  %s108_s9 = scalar_lea.vmem %s72_s7, 32 }
  0x15   :  { %v35_v12 = vstv %s84_s25  ;;  %v43_v13 = vmul.f32 %v91_v1, %v42_v9  ;;  %v54_v14 = vmul.f32 %v91_v1, %v53_v11  ;;  %v45_v16 = vstv %s85_s26  ;;  %p105_p3 = scmp.ne.s32.totalorder %s72_s7, %s104_s8  ;;  %p109_p4 = scmp.lt.s32.totalorder %s72_s7, %s72_s7 }
  0x16   :  { %v34_v15 = vadd.f32 %v33_v8, %v31_v4  ;;  %v56_v17 = vstv %s86_s27  ;;  %v38_v21 = vstv %s162_s30  ;;  %p110_p5 = scmp.lt.s32.totalorder %s108_s9, %s104_s8 }
  0x17   :  { %v44_v18 = vadd.f32 %v43_v13, %v41_v6  ;;  %v55_v19 = vadd.f32 %v54_v14, %v52_v10  ;;  %v48_v25 = vstv %s167_s4  ;;  %v59_v26 = vstv %s169_s5 }
  0x18   :  { %v36_v20 = vadd.f32 %v35_v12, %v34_v15  ;;  %v62_v33 = vstv %s90_s1  ;;  %p111_p6 = por %p110_p5, %p109_p4 }
  0x19   :  { %v46_v22 = vadd.f32 %v45_v16, %v44_v18  ;;  %v57_v23 = vadd.f32 %v56_v17, %v55_v19 }
  0x1a   :  { %v37_v24 = vmax.f32 %v36_v20, 0.0  ;;  %p112_p7 = pnand %p111_p6, %p105_p3 }
  0x1b   :  { %v47_v27 = vmax.f32 %v46_v22, 0.0  ;;  %v58_v28 = vmax.f32 %v57_v23, 0.0 }
  0x1c   :  { %v39_v29 = vmul.f32 %v38_v21, %v37_v24 }
  0x1d   :  { %v49_v30 = vmul.f32 %v48_v25, %v47_v27  ;;  %v60_v31 = vmul.f32 %v59_v26, %v58_v28 }
  0x1f   :  { %v50_v32 = vadd.f32 %v49_v30, %v39_v29 }
  0x21   :  { %v61_v34 = vadd.f32 %v60_v31, %v50_v32 }
  0x23   :  { %v63_v35 = vadd.f32 %v62_v33, %v61_v34 }
  0x25   :  { %64 = vst [vmem:[#allocation4] sm:$0x1] %v63_v35 }
  0x26   :  { %115 = shalt.err (!%p112_p7)
}
  0x27   :  { %s116_s12 = scalar_lea.hbm %s188_s2, 16 }
  0x28   :  { %p117_p8 = scmp.ne.s32.totalorder %s188_s2, %s116_s12  ;;  %p120_p9 = scmp.lt.u32.totalorder %s116_s12, %s188_s2 }
  0x2a   :  { %p122_p10 = pnand %p120_p9, %p117_p8 }
  0x2c   :  { %125 = shalt.err (!%p122_p10)
}
  0x2d   :  { %74 = dma.vmem_to_hbm [thread:$0]  %s72_s7, 16, %s188_s2, [#allocation5]  }
  0x2e   :  { %128 = dma.done.wait [#allocation5], 16  }
  0x2f   :  { %129 = vsyncadd [#allocation5], 4294967280 }
  0x30   :  { %78 = vsyncpa [#allocation5], 1 }

</bundles_post_ra>
